<compile_context>
chip_gen: v7x
topology: tpu7x:2x2x1
jax: 0.10.0
libtpu: 0.0.40
codegen_flags: <defaults>
</compile_context>

<pallas_src>
import functools

import jax
import jax.numpy as jnp
from jax import lax
from jax.experimental import pallas as pl
from jax.experimental.pallas import tpu as pltpu

D_MODEL = 32
NUM_HEADS = 4
NUM_PATCHES = 8
DIM_FF = 64
BATCH = 2
HEAD_DIM = D_MODEL // NUM_HEADS
LN_EPS = 1e-5


def encoder_layer_kernel(x_ref, w_ref, c_ref, o_ref, *,
                         batch, num_patches, num_heads, d_model, dim_ff):
    B, N, H, D, F = batch, num_patches, num_heads, d_model, dim_ff
    HD = D // H
    R = B * N            # query rows (batch folded into sublanes)
    S = B * H * N        # replicated (batch, head, patch) key/value rows

    x = x_ref[...]                                              # (R, D) f32

    # ---- static slices of the two consolidated slabs (VMEM-resident) ----
    wqkv  = w_ref[0:D, 0:3 * D]                                 # (D, 3D) bf16
    wo    = w_ref[0:D, 3 * D:4 * D]                             # (D, D)  bf16
    w1    = w_ref[0:D, 4 * D:4 * D + F]                         # (D, F)  bf16
    w2    = w_ref[0:F, 4 * D + F:5 * D + F]                     # (F, D)  bf16
    a_seg = w_ref[0:S, 5 * D + F:5 * D + F + S]                 # (S, S)  bf16

    bqkv  = c_ref[0:1, 0:3 * D]                                 # f32 biases / LN
    bo    = c_ref[0:1, 3 * D:4 * D]
    ln_g  = c_ref[0:1, 4 * D:5 * D]
    ln_b  = c_ref[0:1, 5 * D:6 * D]
    b1    = c_ref[0:1, 6 * D:6 * D + F]
    b2    = c_ref[0:1, 6 * D + F:7 * D + F]
    attn_bias = c_ref[0:R, 7 * D + F:7 * D + F + S]             # (R, S) 0 / -1e30
    lane_mask = c_ref[0:S, 7 * D + F + S:7 * D + F + S + D]     # (S, D) 0 / 1

    # ---- fused QKV projection: one MXU issue (bf16 in, f32 accumulate) ----
    qkv = jnp.dot(x.astype(jnp.bfloat16), wqkv,
                  preferred_element_type=jnp.float32) + bqkv    # (R, 3D) f32
    q = qkv[:, 0:D]
    k = qkv[:, D:2 * D]
    v = qkv[:, 2 * D:3 * D]

    # ---- block-diagonal multi-head attention ----
    # K / V are replicated once per head along the sublane axis (free-ish
    # sublane broadcast) and lane-masked to their own head's HD lanes, so one
    # (R, S) score matmul + one (R, D) PV matmul cover every head. Q is NOT
    # replicated.
    def rep(t):          # (R, D) -> (S, D), row (b, h, n) = t[b*N + n]
        return jnp.broadcast_to(t.reshape(B, 1, N, D), (B, H, N, D)).reshape(S, D)

    k_big = (rep(k) * lane_mask).astype(jnp.bfloat16)           # (S, D)
    v_big = (rep(v) * lane_mask).astype(jnp.bfloat16)           # (S, D)

    # Scores: contract the lane axes of both operands (no XLU transpose).
    s = lax.dot_general(q.astype(jnp.bfloat16), k_big,
                        (((1,), (1,)), ((), ())),
                        preferred_element_type=jnp.float32)     # (R, S) f32
    s = s * (1.0 / (HD ** 0.5)) + attn_bias   # -1e30 kills wrong-batch columns

    # Lane-segmented softmax in f32: subtract the global row max (a valid
    # column always dominates the -1e30 masked ones), exp, then per-
    # (batch, head) segment denominators via one tiny block-diagonal matmul.
    m = jnp.max(s, axis=-1, keepdims=True)
    p = jnp.exp(s - m)                                          # (R, S) f32
    den = jnp.dot(p.astype(jnp.bfloat16), a_seg,
                  preferred_element_type=jnp.float32)           # (R, S)
    # Masked-out (wrong-batch) segments sum to exactly 0: keep them at 0, not NaN.
    inv_den = jnp.where(den > 0.0, pl.reciprocal(den, approx=False), 0.0)
    p = p * inv_den

    # PV: V is lane-masked per head, so heads land in disjoint lane groups and
    # the result is already (R, D) — no head-sum / concat / relayout needed.
    attn = jnp.dot(p.astype(jnp.bfloat16), v_big,
                   preferred_element_type=jnp.float32)          # (R, D)
    attn = jnp.dot(attn.astype(jnp.bfloat16), wo,
                   preferred_element_type=jnp.float32) + bo

    # ---- residual + LayerNorm (dropout == identity, eval mode), f32 ----
    src = x + attn
    mu = jnp.mean(src, axis=-1, keepdims=True)
    var = jnp.mean((src - mu) ** 2, axis=-1, keepdims=True)
    src = (src - mu) * lax.rsqrt(var + LN_EPS) * ln_g + ln_b

    # ---- feed-forward + residual (no second LayerNorm, matching the module) ----
    h1 = jnp.dot(src.astype(jnp.bfloat16), w1,
                 preferred_element_type=jnp.float32) + b1
    h1 = jnp.maximum(h1, 0.0)
    ffn = jnp.dot(h1.astype(jnp.bfloat16), w2,
                  preferred_element_type=jnp.float32) + b2
    o_ref[...] = (src + ffn).astype(o_ref.dtype)


def pack_params(params, batch, num_patches, num_heads):
    """Host-side, call-once packing of weights/biases/masks into two slabs."""
    wq, bq, wk, bk, wv, bv, wo, bo, ln_g, ln_b, w1, b1, w2, b2 = params
    D = wq.shape[0]
    F = w1.shape[1]
    B, N, H = batch, num_patches, num_heads
    HD = D // H
    R = B * N
    S = B * H * N

    def pad_rows(a, rows):
        return jnp.pad(a, ((0, rows - a.shape[0]), (0, 0)))

    # --- bf16 weight slab: wqkv | wo | w1 | w2 | segment-sum matrix ---
    WR = max(D, F, S)
    wqkv = jnp.concatenate([wq, wk, wv], axis=1)                       # (D, 3D)
    seg = jnp.arange(S) // N                                           # (batch, head) id
    a_seg = (seg[:, None] == seg[None, :]).astype(jnp.float32)         # (S, S)
    w_slab = jnp.concatenate(
        [pad_rows(wqkv, WR), pad_rows(wo, WR), pad_rows(w1, WR),
         pad_rows(w2, WR), pad_rows(a_seg, WR)], axis=1).astype(jnp.bfloat16)

    # --- f32 constant slab: biases/LN row | additive batch mask | lane mask ---
    CR = max(1, R, S)
    biases = jnp.concatenate([bq, bk, bv, bo, ln_g, ln_b, b1, b2], axis=1)  # (1, 7D+F)
    qb = jnp.arange(R) // N                       # batch of each query row
    kb = jnp.arange(S) // (H * N)                 # batch of each key/value row
    attn_bias = jnp.where(qb[:, None] == kb[None, :], 0.0, -1e30).astype(jnp.float32)
    head_row = (jnp.arange(S) // N) % H
    head_lane = jnp.arange(D) // HD
    lane_mask = (head_row[:, None] == head_lane[None, :]).astype(jnp.float32)
    c_slab = jnp.concatenate(
        [pad_rows(biases, CR), pad_rows(attn_bias, CR), pad_rows(lane_mask, CR)],
        axis=1)

    return w_slab, c_slab


def transformer_encoder_layer(src, w_slab, c_slab, *, num_heads=NUM_HEADS,
                              dim_ff=DIM_FF):
    B, N, D = src.shape
    x2d = src.reshape(B * N, D)                   # fold batch into sublane rows

    kernel = functools.partial(encoder_layer_kernel, batch=B, num_patches=N,
                               num_heads=num_heads, d_model=D, dim_ff=dim_ff)
    out2d = pl.pallas_call(
        kernel,
        out_shape=jax.ShapeDtypeStruct((B * N, D), src.dtype),
        in_specs=[pl.BlockSpec(memory_space=pltpu.MemorySpace.VMEM)] * 3,
        out_specs=pl.BlockSpec(memory_space=pltpu.MemorySpace.VMEM),
    )(x2d, w_slab, c_slab)
    return out2d.reshape(B, N, D)


def init_params(key):
    ks = jax.random.split(key, 8)
    scale = 0.02
    wq = jax.random.normal(ks[0], (D_MODEL, D_MODEL), jnp.float32) * scale
    wk = jax.random.normal(ks[1], (D_MODEL, D_MODEL), jnp.float32) * scale
    wv = jax.random.normal(ks[2], (D_MODEL, D_MODEL), jnp.float32) * scale
    wo = jax.random.normal(ks[3], (D_MODEL, D_MODEL), jnp.float32) * scale
    w1 = jax.random.normal(ks[4], (D_MODEL, DIM_FF), jnp.float32) * scale
    w2 = jax.random.normal(ks[5], (DIM_FF, D_MODEL), jnp.float32) * scale
    bq = jnp.zeros((1, D_MODEL), jnp.float32)
    bk = jnp.zeros((1, D_MODEL), jnp.float32)
    bv = jnp.zeros((1, D_MODEL), jnp.float32)
    bo = jnp.zeros((1, D_MODEL), jnp.float32)
    b1 = jnp.zeros((1, DIM_FF), jnp.float32)
    b2 = jnp.zeros((1, D_MODEL), jnp.float32)
    ln_g = jnp.ones((1, D_MODEL), jnp.float32)
    ln_b = jnp.zeros((1, D_MODEL), jnp.float32)
    return [wq, bq, wk, bk, wv, bv, wo, bo, ln_g, ln_b, w1, b1, w2, b2]


def reference(src, params):
    wq, bq, wk, bk, wv, bv, wo, bo, ln_g, ln_b, w1, b1, w2, b2 = params
    B, N, D = src.shape
    q = src @ wq + bq
    k = src @ wk + bk
    v = src @ wv + bv
    q = q.reshape(B, N, NUM_HEADS, HEAD_DIM).transpose(0, 2, 1, 3)
    k = k.reshape(B, N, NUM_HEADS, HEAD_DIM).transpose(0, 2, 1, 3)
    v = v.reshape(B, N, NUM_HEADS, HEAD_DIM).transpose(0, 2, 1, 3)
    s = jnp.einsum("bhnd,bhmd->bhnm", q, k) / (HEAD_DIM ** 0.5)
    p = jax.nn.softmax(s, axis=-1)
    a = jnp.einsum("bhnm,bhmd->bhnd", p, v).transpose(0, 2, 1, 3).reshape(B, N, D)
    a = a @ wo + bo
    x = src + a
    mu = jnp.mean(x, axis=-1, keepdims=True)
    var = jnp.mean((x - mu) ** 2, axis=-1, keepdims=True)
    x = (x - mu) * lax.rsqrt(var + LN_EPS) * ln_g + ln_b
    h = jnp.maximum(x @ w1 + b1, 0.0)
    return x + (h @ w2 + b2)


if __name__ == "__main__":
    key = jax.random.PRNGKey(0)
    k_in, k_par = jax.random.split(key)
    src = jax.random.normal(k_in, (BATCH, NUM_PATCHES, D_MODEL), jnp.float32)
    params = init_params(k_par)

    # Hoisted, call-once packing of all operands into two slabs.
    w_slab, c_slab = pack_params(params, BATCH, NUM_PATCHES, NUM_HEADS)

    out = transformer_encoder_layer(src, w_slab, c_slab)
    out = jax.block_until_ready(out)

    ref = reference(src, params)
    assert out.shape == ref.shape
    # 5e-3 tolerance: MXU operands are bf16 (f32 accumulation); everything
    # else (softmax, LayerNorm, residuals) is exact f32.
    assert jnp.allclose(out, ref, atol=5e-3, rtol=5e-3)
    print("KERNEL_OK")
</pallas_src>

<mosaic_0001>
module attributes {stable_mosaic.version = 11 : i64} {
  func.func @encoder_layer_kernel(%arg0: memref<16x32xf32, #tpu.memory_space<vmem>>, %arg1: memref<64x288xbf16, #tpu.memory_space<vmem>>, %arg2: memref<64x384xf32, #tpu.memory_space<vmem>>, %arg3: memref<16x32xf32, #tpu.memory_space<vmem>>) attributes {dimension_semantics = [], scalar_prefetch = 0 : i64, scratch_operands = 0 : i64, tpu.core_type = #tpu.core_type<tc>} {
    %c0 = arith.constant 0 : index
    %c0_0 = arith.constant 0 : index
    %0 = vector.load %arg0[%c0, %c0_0] : memref<16x32xf32, #tpu.memory_space<vmem>>, vector<16x32xf32>
    %c0_1 = arith.constant 0 : index
    %c0_2 = arith.constant 0 : index
    %1 = vector.load %arg1[%c0_1, %c0_2] : memref<64x288xbf16, #tpu.memory_space<vmem>>, vector<32x96xbf16>
    %c0_3 = arith.constant 0 : index
    %c96 = arith.constant 96 : index
    %2 = vector.load %arg1[%c0_3, %c96] : memref<64x288xbf16, #tpu.memory_space<vmem>>, vector<32x32xbf16>
    %c0_4 = arith.constant 0 : index
    %c128 = arith.constant 128 : index
    %3 = vector.load %arg1[%c0_4, %c128] : memref<64x288xbf16, #tpu.memory_space<vmem>>, vector<32x64xbf16>
    %c0_5 = arith.constant 0 : index
    %c192 = arith.constant 192 : index
    %4 = vector.load %arg1[%c0_5, %c192] : memref<64x288xbf16, #tpu.memory_space<vmem>>, vector<64x32xbf16>
    %c0_6 = arith.constant 0 : index
    %c224 = arith.constant 224 : index
    %5 = vector.load %arg1[%c0_6, %c224] : memref<64x288xbf16, #tpu.memory_space<vmem>>, vector<64x64xbf16>
    %c0_7 = arith.constant 0 : index
    %c0_8 = arith.constant 0 : index
    %6 = vector.load %arg2[%c0_7, %c0_8] : memref<64x384xf32, #tpu.memory_space<vmem>>, vector<1x96xf32>
    %c0_9 = arith.constant 0 : index
    %c96_10 = arith.constant 96 : index
    %7 = vector.load %arg2[%c0_9, %c96_10] : memref<64x384xf32, #tpu.memory_space<vmem>>, vector<1x32xf32>
    %c0_11 = arith.constant 0 : index
    %c128_12 = arith.constant 128 : index
    %8 = vector.load %arg2[%c0_11, %c128_12] : memref<64x384xf32, #tpu.memory_space<vmem>>, vector<1x32xf32>
    %c0_13 = arith.constant 0 : index
    %c160 = arith.constant 160 : index
    %9 = vector.load %arg2[%c0_13, %c160] : memref<64x384xf32, #tpu.memory_space<vmem>>, vector<1x32xf32>
    %c0_14 = arith.constant 0 : index
    %c192_15 = arith.constant 192 : index
    %10 = vector.load %arg2[%c0_14, %c192_15] : memref<64x384xf32, #tpu.memory_space<vmem>>, vector<1x64xf32>
    %c0_16 = arith.constant 0 : index
    %c256 = arith.constant 256 : index
    %11 = vector.load %arg2[%c0_16, %c256] : memref<64x384xf32, #tpu.memory_space<vmem>>, vector<1x32xf32>
    %c0_17 = arith.constant 0 : index
    %c288 = arith.constant 288 : index
    %12 = vector.load %arg2[%c0_17, %c288] : memref<64x384xf32, #tpu.memory_space<vmem>>, vector<16x64xf32>
    %c0_18 = arith.constant 0 : index
    %c352 = arith.constant 352 : index
    %13 = vector.load %arg2[%c0_18, %c352] : memref<64x384xf32, #tpu.memory_space<vmem>>, vector<64x32xf32>
    %14 = arith.truncf %0 : vector<16x32xf32> to vector<16x32xbf16>
    %cst = arith.constant dense<0.000000e+00> : vector<16x96xf32>
    %15 = tpu.matmul %14, %1, %cst {dimension_numbers = #tpu.dot_dimension_numbers<[1], [0], [0], [1], [0, 0, 1, 1], [], []>} : vector<16x32xbf16>, vector<32x96xbf16>, vector<16x96xf32> -> vector<16x96xf32>
    %16 = vector.broadcast %6 : vector<1x96xf32> to vector<16x96xf32>
    %17 = arith.addf %15, %16 : vector<16x96xf32>
    %18 = vector.extract_strided_slice %17 {offsets = [0, 0], sizes = [16, 32], strides = [1, 1]} : vector<16x96xf32> to vector<16x32xf32>
    %19 = vector.extract_strided_slice %17 {offsets = [0, 32], sizes = [16, 32], strides = [1, 1]} : vector<16x96xf32> to vector<16x32xf32>
    %20 = vector.extract_strided_slice %17 {offsets = [0, 64], sizes = [16, 32], strides = [1, 1]} : vector<16x96xf32> to vector<16x32xf32>
    %21 = vector.shape_cast %19 : vector<16x32xf32> to vector<2x1x8x32xf32>
    %22 = vector.shape_cast %21 : vector<2x1x8x32xf32> to vector<2x1x8x32xf32>
    %23 = vector.broadcast %22 : vector<2x1x8x32xf32> to vector<2x4x8x32xf32>
    %24 = vector.shape_cast %23 : vector<2x4x8x32xf32> to vector<64x32xf32>
    %25 = arith.mulf %24, %13 : vector<64x32xf32>
    %26 = arith.truncf %25 : vector<64x32xf32> to vector<64x32xbf16>
    %27 = vector.shape_cast %20 : vector<16x32xf32> to vector<2x1x8x32xf32>
    %28 = vector.shape_cast %27 : vector<2x1x8x32xf32> to vector<2x1x8x32xf32>
    %29 = vector.broadcast %28 : vector<2x1x8x32xf32> to vector<2x4x8x32xf32>
    %30 = vector.shape_cast %29 : vector<2x4x8x32xf32> to vector<64x32xf32>
    %31 = arith.mulf %30, %13 : vector<64x32xf32>
    %32 = arith.truncf %31 : vector<64x32xf32> to vector<64x32xbf16>
    %33 = arith.truncf %18 : vector<16x32xf32> to vector<16x32xbf16>
    %cst_19 = arith.constant dense<0.000000e+00> : vector<16x64xf32>
    %34 = tpu.matmul %33, %26, %cst_19 {dimension_numbers = #tpu.dot_dimension_numbers<[1], [1], [0], [0], [0, 0, 1, 0], [], []>} : vector<16x32xbf16>, vector<64x32xbf16>, vector<16x64xf32> -> vector<16x64xf32>
    %cst_20 = arith.constant 0.353553385 : f32
    %35 = vector.broadcast %cst_20 : f32 to vector<16x64xf32>
    %36 = arith.mulf %34, %35 : vector<16x64xf32>
    %37 = arith.addf %36, %12 : vector<16x64xf32>
    %cst_21 = arith.constant dense<0xFF800000> : vector<16xf32>
    %38 = vector.multi_reduction <maximumf>, %37, %cst_21 [1] : vector<16x64xf32> to vector<16xf32>
    %39 = vector.shape_cast %38 : vector<16xf32> to vector<16x1xf32>
    %40 = vector.broadcast %39 : vector<16x1xf32> to vector<16x64xf32>
    %41 = arith.subf %37, %40 : vector<16x64xf32>
    %42 = math.exp %41 : vector<16x64xf32>
    %43 = arith.truncf %42 : vector<16x64xf32> to vector<16x64xbf16>
    %cst_22 = arith.constant dense<0.000000e+00> : vector<16x64xf32>
    %44 = tpu.matmul %43, %5, %cst_22 {dimension_numbers = #tpu.dot_dimension_numbers<[1], [0], [0], [1], [0, 0, 1, 1], [], []>} : vector<16x64xbf16>, vector<64x64xbf16>, vector<16x64xf32> -> vector<16x64xf32>
    %cst_23 = arith.constant 0.000000e+00 : f32
    %45 = vector.broadcast %cst_23 : f32 to vector<16x64xf32>
    %46 = arith.cmpf ogt, %44, %45 : vector<16x64xf32>
    %47 = tpu.reciprocal %44 : vector<16x64xf32> -> vector<16x64xf32>
    %cst_24 = arith.constant 0.000000e+00 : f32
    %48 = vector.broadcast %cst_24 : f32 to vector<16x64xf32>
    %49 = arith.select %46, %47, %48 : vector<16x64xi1>, vector<16x64xf32>
    %50 = arith.mulf %42, %49 : vector<16x64xf32>
    %51 = arith.truncf %50 : vector<16x64xf32> to vector<16x64xbf16>
    %cst_25 = arith.constant dense<0.000000e+00> : vector<16x32xf32>
    %52 = tpu.matmul %51, %32, %cst_25 {dimension_numbers = #tpu.dot_dimension_numbers<[1], [0], [0], [1], [0, 0, 1, 1], [], []>} : vector<16x64xbf16>, vector<64x32xbf16>, vector<16x32xf32> -> vector<16x32xf32>
    %53 = arith.truncf %52 : vector<16x32xf32> to vector<16x32xbf16>
    %cst_26 = arith.constant dense<0.000000e+00> : vector<16x32xf32>
    %54 = tpu.matmul %53, %2, %cst_26 {dimension_numbers = #tpu.dot_dimension_numbers<[1], [0], [0], [1], [0, 0, 1, 1], [], []>} : vector<16x32xbf16>, vector<32x32xbf16>, vector<16x32xf32> -> vector<16x32xf32>
    %55 = vector.broadcast %7 : vector<1x32xf32> to vector<16x32xf32>
    %56 = arith.addf %54, %55 : vector<16x32xf32>
    %57 = arith.addf %0, %56 : vector<16x32xf32>
    %cst_27 = arith.constant dense<0.000000e+00> : vector<16xf32>
    %58 = vector.multi_reduction <add>, %57, %cst_27 [1] : vector<16x32xf32> to vector<16xf32>
    %59 = vector.shape_cast %58 : vector<16xf32> to vector<16x1xf32>
    %cst_28 = arith.constant 3.200000e+01 : f32
    %60 = vector.broadcast %cst_28 : f32 to vector<16x1xf32>
    %61 = arith.divf %59, %60 : vector<16x1xf32>
    %62 = vector.broadcast %61 : vector<16x1xf32> to vector<16x32xf32>
    %63 = arith.subf %57, %62 : vector<16x32xf32>
    %64 = arith.mulf %63, %63 : vector<16x32xf32>
    %cst_29 = arith.constant dense<0.000000e+00> : vector<16xf32>
    %65 = vector.multi_reduction <add>, %64, %cst_29 [1] : vector<16x32xf32> to vector<16xf32>
    %66 = vector.shape_cast %65 : vector<16xf32> to vector<16x1xf32>
    %cst_30 = arith.constant 3.200000e+01 : f32
    %67 = vector.broadcast %cst_30 : f32 to vector<16x1xf32>
    %68 = arith.divf %66, %67 : vector<16x1xf32>
    %69 = vector.broadcast %61 : vector<16x1xf32> to vector<16x32xf32>
    %70 = arith.subf %57, %69 : vector<16x32xf32>
    %cst_31 = arith.constant 9.99999974E-6 : f32
    %71 = vector.broadcast %cst_31 : f32 to vector<16x1xf32>
    %72 = arith.addf %68, %71 : vector<16x1xf32>
    %73 = math.rsqrt %72 : vector<16x1xf32>
    %74 = vector.broadcast %73 : vector<16x1xf32> to vector<16x32xf32>
    %75 = arith.mulf %70, %74 : vector<16x32xf32>
    %76 = vector.broadcast %8 : vector<1x32xf32> to vector<16x32xf32>
    %77 = arith.mulf %75, %76 : vector<16x32xf32>
    %78 = vector.broadcast %9 : vector<1x32xf32> to vector<16x32xf32>
    %79 = arith.addf %77, %78 : vector<16x32xf32>
    %80 = arith.truncf %79 : vector<16x32xf32> to vector<16x32xbf16>
    %cst_32 = arith.constant dense<0.000000e+00> : vector<16x64xf32>
    %81 = tpu.matmul %80, %3, %cst_32 {dimension_numbers = #tpu.dot_dimension_numbers<[1], [0], [0], [1], [0, 0, 1, 1], [], []>} : vector<16x32xbf16>, vector<32x64xbf16>, vector<16x64xf32> -> vector<16x64xf32>
    %82 = vector.broadcast %10 : vector<1x64xf32> to vector<16x64xf32>
    %83 = arith.addf %81, %82 : vector<16x64xf32>
    %cst_33 = arith.constant 0.000000e+00 : f32
    %84 = vector.broadcast %cst_33 : f32 to vector<16x64xf32>
    %85 = arith.maximumf %83, %84 : vector<16x64xf32>
    %86 = arith.truncf %85 : vector<16x64xf32> to vector<16x64xbf16>
    %cst_34 = arith.constant dense<0.000000e+00> : vector<16x32xf32>
    %87 = tpu.matmul %86, %4, %cst_34 {dimension_numbers = #tpu.dot_dimension_numbers<[1], [0], [0], [1], [0, 0, 1, 1], [], []>} : vector<16x64xbf16>, vector<64x32xbf16>, vector<16x32xf32> -> vector<16x32xf32>
    %88 = vector.broadcast %11 : vector<1x32xf32> to vector<16x32xf32>
    %89 = arith.addf %87, %88 : vector<16x32xf32>
    %90 = arith.addf %79, %89 : vector<16x32xf32>
    %c0_35 = arith.constant 0 : index
    %c0_36 = arith.constant 0 : index
    %91 = vector.load %arg3[%c0_35, %c0_36] : memref<16x32xf32, #tpu.memory_space<vmem>>, vector<16x32xf32>
    tpu.vector_store %arg3[%c0_35, %c0_36], %90 {strides = array<i32>} : memref<16x32xf32, #tpu.memory_space<vmem>>, vector<16x32xf32>,
    return
  }
}

</mosaic_0001>

<bundles_post_ra>
// kernel: tpu_custom_call.1
= control target key start
LH: loop header
LB: loop body
LE: loop exit
PB: predicated region body
PF: predicated region fallthrough
CT: control target
= control target key end

     0   :  { %8 = vsyncpa [#allocation3], 0  ;;  %s1267_s0 = inlined_call_operand.hbm [shape: f32[16,32], index: 0, kind: input, shape index: {}]   ;;  %s1268_s1 = inlined_call_operand.hbm [shape: bf16[64,288], index: 1, kind: input, shape index: {}]   ;;  %s1269_s2 = inlined_call_operand.hbm [shape: f32[64,384], index: 2, kind: input, shape index: {}]   ;;  %s1270_s3 = inlined_call_operand.hbm [shape: f32[16,32], index: 3, kind: output, shape index: {}]  }
   0x1   :  { %9 = vsyncpa [#allocation6], 0 }
   0x2   :  { %10 = vsyncpa [#allocation4], 0  ;;  %s999_s12 = smov [#allocation5]   ;;  %s905_s16 = scalar_lea.hbm %s1268_s1, 1536 }
   0x3   :  { %s28_s13 = sshll.u32 %s999_s12, 4  ;;  %p906_p0 = scmp.ne.s32.totalorder %s1268_s1, %s905_s16  ;;  %s29_s13 = int_to_ptr.vmem [resolvable:$true] %s28_s13 }
   0x4   :  { %p909_p1 = scmp.lt.u32.totalorder %s905_s16, %s1268_s1 }
   0x6   :  { %p911_p2 = pnand %p909_p1, %p906_p0 }
   0x8   :  { %914 = shalt.err (!%p911_p2)
}
   0x9   :  { %s915_s21 = scalar_lea.vmem %s29_s13, 1536  ;;  %p920_p4 = scmp.lt.s32.totalorder %s29_s13, %s29_s13 }
   0xa   :  { %p916_p3 = scmp.ne.s32.totalorder %s29_s13, %s915_s21  ;;  %p921_p5 = scmp.lt.s32.totalorder %s915_s21, %s915_s21 }
   0xc   :  { %p922_p6 = por %p921_p5, %p920_p4 }
   0xe   :  { %p923_p7 = pnand %p922_p6, %p916_p3 }
  0x10   :  { %926 = shalt.err (!%p923_p7)
}
  0x11   :  { %s1000_s22 = smov 192   ;;  %s1001_s23 = smov 12  }
  0x12   :  { %34 = dma.hbm_to_vmem [thread:$0]  %s1268_s1, 1536, %s29_s13, [#allocation6], %s1000_s22, %s1000_s22, %s1001_s23  }
  0x13   :  { %s1002_s26 = smov [#allocation2]   ;;  %s927_s30 = scalar_lea.hbm %s1267_s0, 256 }
  0x14   :  { %s16_s27 = sshll.u32 %s1002_s26, 4  ;;  %p928_p8 = scmp.ne.s32.totalorder %s1267_s0, %s927_s30  ;;  %s17_s27 = int_to_ptr.vmem [resolvable:$true] %s16_s27 }
  0x15   :  { %p931_p9 = scmp.lt.u32.totalorder %s927_s30, %s1267_s0 }
  0x17   :  { %p933_p10 = pnand %p931_p9, %p928_p8 }
  0x19   :  { %936 = shalt.err (!%p933_p10)
}
  0x1a   :  { %s937_s8 = scalar_lea.vmem %s17_s27, 256  ;;  %p942_p12 = scmp.lt.s32.totalorder %s17_s27, %s17_s27 }
  0x1b   :  { %p938_p11 = scmp.ne.s32.totalorder %s17_s27, %s937_s8  ;;  %p943_p13 = scmp.lt.s32.totalorder %s937_s8, %s937_s8 }
  0x1d   :  { %p944_p0 = por %p943_p13, %p942_p12 }
  0x1f   :  { %p945_p1 = pnand %p944_p0, %p938_p11 }
  0x21   :  { %948 = shalt.err (!%p945_p1)
}
  0x22   :  { %s1003_s1 = smov 128   ;;  %s1004_s9 = smov 8  }
  0x23   :  { %22 = dma.hbm_to_vmem [thread:$0]  %s1267_s0, 256, %s17_s27, [#allocation3], %s1003_s1, %s1003_s1, %s1004_s9  }
  0x24   :  { %s1005_s12 = smov [#allocation7]   ;;  %s949_s16 = scalar_lea.hbm %s1269_s2, 3072 }
  0x25   :  { %s40_s13 = sshll.u32 %s1005_s12, 4  ;;  %p950_p2 = scmp.ne.s32.totalorder %s1269_s2, %s949_s16  ;;  %s41_s13 = int_to_ptr.vmem [resolvable:$true] %s40_s13 }
  0x26   :  { %p953_p3 = scmp.lt.u32.totalorder %s949_s16, %s1269_s2 }
  0x28   :  { %p955_p4 = pnand %p953_p3, %p950_p2 }
  0x2a   :  { %958 = shalt.err (!%p955_p4)
}
  0x2b   :  { %s959_s21 = scalar_lea.vmem %s41_s13, 3072  ;;  %p964_p6 = scmp.lt.s32.totalorder %s41_s13, %s41_s13 }
  0x2c   :  { %p960_p5 = scmp.ne.s32.totalorder %s41_s13, %s959_s21  ;;  %p965_p7 = scmp.lt.s32.totalorder %s959_s21, %s959_s21 }
  0x2e   :  { %p966_p8 = por %p965_p7, %p964_p6 }
  0x30   :  { %p967_p9 = pnand %p966_p8, %p960_p5 }
  0x32   :  { %970 = shalt.err (!%p967_p9)
}
  0x33   :  { %s1006_s0 = smov 384   ;;  %s1007_s22 = smov 24  }
  0x34   :  { %46 = dma.hbm_to_vmem [thread:$0]  %s1269_s2, 3072, %s41_s13, [#allocation6], %s1006_s0, %s1006_s0, %s1007_s22  }
  0x35   :  { %993 = dma.done.wait [#allocation3], 256  }
  0x36   :  { %994 = vsyncadd [#allocation3], 4294967040 }
  0x37   :  { %995 = dma.done.wait [#allocation6], 4608  }
  0x38   :  { %996 = vsyncadd [#allocation6], 4294962688  ;;  %v1008_v0 = vmov 0.0   ;;  %vm1009_vm0 = vmmov 0   ;;  %v1079_v1 = vld [vmem:[#allocation5] ss:$12 sps:$4 sm:$0xff]  }
  0x39   :  { %788 = vmatprep.subr.bf16.mxu0 %v1008_v0  ;;  %792 = vmatprep.mubr.msk.bf16.mxu0 %vm1009_vm0, %v1008_v0  ;;  %v1081_v2 = vld [vmem:[#allocation5 + $0x18] ss:$12 sps:$4 sm:$0xff]   ;;  %v1084_v3 = vld [vmem:[#allocation2] sm:$0xff]  ;;  %s1010_s2 = smov 64   ;;  %v1101_v9 = vld [vmem:[#allocation7 + $0x28] sm:$0xff]  ;;  %vm105_vm1 = vcmask 261120  }
  0x3a   :  { %796 = vmatprep.subr.bf16.mxu1 %v1008_v0  ;;  %804 = vmatprep.mubr.msk.bf16.mxu1 %vm1009_vm0, %v1008_v0  ;;  %v1086_v4 = vld [vmem:[#allocation2 + $0x8] sm:$0xff]  ;;  %v1088_v5 = vld [vmem:[#allocation7 + $0x40] sm:$0xff]  ;;  %v1093_v6 = vld [vmem:[#allocation7 + $0x10] sm:$0xff]  ;;  %s1011_s25 = smov 96   ;;  %s1012_s26 = smov 32   ;;  %vm311_vm2 = vcmask 523264  }
  0x3b   :  { %789 = vmatpush3.bf16.msra.mxu0 %v1079_v1  ;;  %162 = vrot.lane.b32.xlu1 %v1088_v5, %s1010_s2  ;;  %v1097_v7 = vld [vmem:[#allocation7 + $0x58] sm:$0xff]  ;;  %v92_v8 = vpack.c.bf16 %v1086_v4, %v1084_v3  ;;  %v1104_v10 = vld [vmem:[#allocation7 + $0x88] sm:$0xff]  ;;  %v1108_v11 = vld [vmem:[#allocation7 + $0x70] sm:$0xff]  ;;  %s1013_s27 = smov [#allocation8]  }
  0x3c   :  { %790 = vmatprep.subr.bf16.mxu0 %v1008_v0  ;;  %158 = vrot.lane.b32.xlu0 %v1093_v6, %s1010_s2  ;;  %v1120_v12 = vld [vmem:[#allocation7 + $0xb8] sm:$0xff]  ;;  %v1122_v13 = vld [vmem:[#allocation7 + $0xa0] sm:$0xff]  ;;  %v877_v41 = vld [vmem:[#allocation5 + $0x8] ss:$12 sps:$4 sm:$0xff]   ;;  %s725_s28 = sshll.u32 %s1013_s27, 4  ;;  %s726_s28 = int_to_ptr.vmem [resolvable:$true] %s725_s28 }
  0x3d   :  { %v1128_v20 = vld [vmem:[#allocation7] ss:$0 sm:$0xff]  ;;  %v879_v42 = vld [vmem:[#allocation5 + $0x4] ss:$12 sps:$4 sm:$0xff]   ;;  %v882_v44 = vld [vmem:[#allocation5 + $0x1c] ss:$12 sps:$4 sm:$0xff]   ;;  %p976_p11 = scmp.lt.s32.totalorder %s726_s28, %s726_s28 }
  0x3e   :  { %v880_v43 = vld [vmem:[#allocation5 + $0x20] ss:$12 sps:$4 sm:$0xff]   ;;  %v883_v45 = vld [vmem:[#allocation5 + $0x38] ss:$12 sps:$4 sm:$0xff]   ;;  %s971_s29 = scalar_lea.vmem %s726_s28, 256 }
  0x3f   :  { %791 = vmatpush3.bf16.msra.mxu0 %v1081_v2  ;;  %164 = vrot.lane.b32.xlu1 %v1097_v7, %s1010_s2  ;;  %v885_v46 = vld [vmem:[#allocation5 + $0x34] ss:$12 sps:$4 sm:$0xff]   ;;  %p972_p10 = scmp.ne.s32.totalorder %s726_s28, %s971_s29  ;;  %p977_p12 = scmp.lt.s32.totalorder %s971_s29, %s971_s29 }
  0x40   :  { %808 = vmatprep.subr.bf16.mxu0 %v1008_v0  ;;  %160 = vrot.lane.b32.xlu0 %v1101_v9, %s1010_s2 }
  0x41   :  { %p978_p13 = por %p977_p12, %p976_p11 }
  0x42   :  { %793 = vmatmul.mubr.msk.bf16.vlgmr.msra.gmra.mrb[0].mxu0 %vm105_vm1, %v92_v8 }
  0x43   :  { %816 = vmatprep.mubr.msk.bf16.mxu0 %vm1009_vm0, %v1008_v0  ;;  %168 = vrot.lane.b32.xlu1 %v1104_v10, %s1010_s2  ;;  %p979_p0 = pnand %p978_p13, %p972_p10 }
  0x44   :  { %166 = vrot.lane.b32.xlu0 %v1108_v11, %s1010_s2 }
  0x47   :  { %172 = vrot.lane.b32.xlu1 %v1120_v12, %s1010_s2 }
  0x48   :  { %170 = vrot.lane.b32.xlu0 %v1122_v13, %s1010_s2 }
  0xad   :  { %v163_v14 = vpop.permute.xlu1 %162 }
  0xae   :  { %v159_v15 = vpop.permute.xlu0 %158 }
  0xb1   :  { %v165_v16 = vpop.permute.xlu1 %164 }
  0xb2   :  { %v161_v17 = vpop.permute.xlu0 %160 }
  0xb5   :  { %v169_v18 = vpop.permute.xlu1 %168 }
  0xb6   :  { %v167_v19 = vpop.permute.xlu0 %166 }
  0xb9   :  { %v173_v24 = vpop.permute.xlu1 %172 }
  0xba   :  { %v171_v26 = vpop.permute.xlu0 %170 }
 0x115   :  { %v143_v21 = vpop.f32.mrb[0].mxu0 }
 0x116   :  { %v1131_v22 = vadd.f32 %v143_v21, %v1128_v20  ;;  %v794_v23 = vpop.f32.mrb[1].mxu0 }
 0x117   :  { %v146_v25 = vpop.f32.mrb[2].mxu0 }
 0x118   :  { %v1134_v27 = vadd.f32 %v146_v25, %v1128_v20  ;;  %v795_v28 = vpop.f32.mrb[3].mxu0  ;;  %v184_v29 = vmul.f32 %v163_v14, %v1131_v22  ;;  %v185_v30 = vmul.f32 %v165_v16, %v1131_v22  ;;  %v182_v31 = vmul.f32 %v159_v15, %v1131_v22 }
 0x119   :  { %v183_v32 = vmul.f32 %v161_v17, %v1131_v22 }
 0x11a   :  { %v189_v33 = vmul.f32 %v173_v24, %v1134_v27  ;;  %v188_v34 = vmul.f32 %v171_v26, %v1134_v27  ;;  %v191_v35 = vpack.c.bf16 %v185_v30, %v184_v29  ;;  %v186_v37 = vmul.f32 %v167_v19, %v1134_v27  ;;  %v888_v29 = vld [vmem:[#allocation5 + $0x50] ss:$12 sps:$4 sm:$0xff]   ;;  %v886_v30 = vld [vmem:[#allocation5 + $0x4c] ss:$12 sps:$4 sm:$0xff]  }
 0x11b   :  { %v190_v36 = vpack.c.bf16 %v183_v32, %v182_v31  ;;  %v187_v38 = vmul.f32 %v169_v18, %v1134_v27  ;;  %v230_v55 = vpack.c.bf16 %v1134_v27, %v1131_v22 }
 0x11c   :  { %237 = vrot.lane.b32.xlu1 %v191_v35, %s1011_s25  ;;  %v193_v39 = vpack.c.bf16 %v189_v33, %v188_v34 }
 0x11d   :  { %235 = vrot.lane.b32.xlu0 %v190_v36, %s1011_s25  ;;  %v192_v40 = vpack.c.bf16 %v187_v38, %v186_v37 }
 0x120   :  { %241 = vrot.lane.b32.xlu1 %v193_v39, %s1011_s25 }
 0x121   :  { %239 = vrot.lane.b32.xlu0 %v192_v40, %s1011_s25 }
 0x124   :  { %305 = vrot.lane.b32.xlu1 %v1101_v9, %s1011_s25 }
 0x125   :  { %303 = vrot.lane.b32.xlu0 %v1093_v6, %s1011_s25 }
 0x128   :  { %359 = vrot.lane.b32.xlu1 %v877_v41, %s1012_s26 }
 0x129   :  { %357 = vrot.lane.b32.xlu0 %v879_v42, %s1012_s26 }
 0x12c   :  { %363 = vrot.lane.b32.xlu1 %v880_v43, %s1012_s26 }
 0x12d   :  { %361 = vrot.lane.b32.xlu0 %v882_v44, %s1012_s26 }
 0x130   :  { %367 = vrot.lane.b32.xlu1 %v883_v45, %s1012_s26 }
 0x131   :  { %365 = vrot.lane.b32.xlu0 %v885_v46, %s1012_s26 }
 0x18e   :  { %v238_v49 = vpop.permute.xlu1 %237 }
 0x18f   :  { %v236_v47 = vpop.permute.xlu0 %235  ;;  %v250_v50 = vsel %vm105_vm1, %v238_v49, 0 }
 0x190   :  { %v247_v48 = vsel %vm105_vm1, %v236_v47, 0 }
 0x191   :  { %797 = vmatpush3.bf16.xpose.msra.mxu1 %v247_v48 }
 0x192   :  { %798 = vmatprep.subr.bf16.mxu1 %v1008_v0  ;;  %v242_v53 = vpop.permute.xlu1 %241 }
 0x193   :  { %v240_v51 = vpop.permute.xlu0 %239  ;;  %v256_v54 = vsel %vm105_vm1, %v242_v53, 0 }
 0x194   :  { %v253_v52 = vsel %vm105_vm1, %v240_v51, 0 }
 0x196   :  { %v306_v57 = vpop.permute.xlu1 %305 }
 0x197   :  { %v304_v56 = vpop.permute.xlu0 %303 }
 0x199   :  { %799 = vmatpush3.bf16.xpose.msra.mxu1 %v250_v50 }
 0x19a   :  { %800 = vmatprep.subr.bf16.mxu1 %v1008_v0  ;;  %v360_v58 = vpop.permute.xlu1 %359 }
 0x19b   :  { %v358_v59 = vpop.permute.xlu0 %357 }
 0x19c   :  { %v374_v60 = vsel %vm105_vm1, %v358_v59, %v360_v58 }
 0x19d   :  { %809 = vmatpush3.bf16.msra.mxu0 %v374_v60 }
 0x19e   :  { %810 = vmatprep.subr.bf16.mxu0 %v1008_v0  ;;  %v364_v61 = vpop.permute.xlu1 %363 }
 0x19f   :  { %v362_v62 = vpop.permute.xlu0 %361 }
 0x1a0   :  { %v375_v63 = vsel %vm105_vm1, %v362_v62, %v364_v61 }
 0x1a1   :  { %801 = vmatpush3.bf16.xpose.msra.mxu1 %v253_v52  ;;  %811 = vmatpush3.bf16.msra.mxu0 %v375_v63 }
 0x1a2   :  { %802 = vmatprep.subr.bf16.mxu1 %v1008_v0  ;;  %812 = vmatprep.subr.bf16.mxu0 %v1008_v0  ;;  %v368_v8 = vpop.permute.xlu1 %367 }
 0x1a3   :  { %v366_v14 = vpop.permute.xlu0 %365 }
 0x1a4   :  { %v376_v15 = vsel %vm105_vm1, %v366_v14, %v368_v8 }
 0x1a5   :  { %813 = vmatpush3.bf16.msra.mxu0 %v376_v15 }
 0x1a6   :  { %814 = vmatprep.subr.bf16.mxu0 %v1008_v0 }
 0x1a9   :  { %803 = vmatpush3.bf16.xpose.msra.mxu1 %v256_v54 }
 0x1aa   :  { %832 = vmatprep.subr.bf16.mxu1 %v1008_v0 }
 0x1b0   :  { %805 = vmatmul.mubr.msk.bf16.vlgmr.msra.gmra.mrb[0].mxu1 %vm105_vm1, %v230_v55 }
 0x1b1   :  { %836 = vmatprep.mubr.msk.bf16.mxu1 %vm1009_vm0, %v1008_v0 }
 0x283   :  { %v292_v16 = vpop.f32.mrb[0].mxu1 }
 0x284   :  { %v299_v17 = vmul.f32 0.35355338, %v292_v16  ;;  %v806_v18 = vpop.f32.mrb[1].mxu1 }
 0x285   :  { %v295_v19 = vpop.f32.mrb[2].mxu1 }
 0x286   :  { %v300_v21 = vmul.f32 0.35355338, %v295_v19  ;;  %v309_v23 = vadd.f32 %v304_v56, %v299_v17  ;;  %v807_v24 = vpop.f32.mrb[3].mxu1 }
 0x288   :  { %v310_v25 = vadd.f32 %v306_v57, %v300_v21  ;;  %v312_v26 = vsel %vm311_vm2, %v309_v23, -inf }
 0x289   :  { %313 = vmax.xlane.f32.xlu0 %v312_v26 }
 0x28a   :  { %v315_v28 = vsel %vm311_vm2, %v310_v25, -inf }
 0x28b   :  { %316 = vmax.xlane.f32.xlu1 %v315_v28 }
 0x29c   :  { %371 = vrot.lane.b32.xlu1 %v888_v29, %s1012_s26 }
 0x29f   :  { %369 = vrot.lane.b32.xlu0 %v886_v30, %s1012_s26 }
 0x2a0   :  { %196 = vrot.lane.b32.xlu1 %v1101_v9, %s1011_s25 }
 0x2a3   :  { %194 = vrot.lane.b32.xlu0 %v1093_v6, %s1011_s25 }
 0x2a4   :  { %200 = vrot.lane.b32.xlu1 %v1097_v7, %s1011_s25 }
 0x2a7   :  { %198 = vrot.lane.b32.xlu0 %v1088_v5, %s1011_s25 }
 0x2a8   :  { %204 = vrot.lane.b32.xlu1 %v1104_v10, %s1011_s25 }
 0x2ab   :  { %202 = vrot.lane.b32.xlu0 %v1108_v11, %s1011_s25 }
 0x2ac   :  { %208 = vrot.lane.b32.xlu1 %v1120_v12, %s1011_s25 }
 0x2af   :  { %206 = vrot.lane.b32.xlu0 %v1122_v13, %s1011_s25 }
 0x316   :  { %v314_v9 = vpop.xlane.xlu0 %313 }
 0x317   :  { %v318_v6 = vsub.f32 %v309_v23, %v314_v9 }
 0x318   :  { %v317_v31 = vpop.xlane.xlu1 %316 }
 0x319   :  { %v320_v32 = vmul.f32 1.442695, %v318_v6  ;;  %v319_v7 = vsub.f32 %v310_v25, %v317_v31 }
 0x31a   :  { %v370_v33 = vpop.permute.xlu0 %369 }
 0x31b   :  { %v322_v34 = vmul.f32 1.442695, %v319_v7  ;;  %893 = vpow2.f32 %v320_v32 }
 0x31c   :  { %v372_v5 = vpop.permute.xlu1 %371 }
 0x31d   :  { %895 = vpow2.f32 %v322_v34  ;;  %v377_v10 = vsel %vm105_vm1, %v370_v33, %v372_v5 }
 0x31e   :  { %v195_v35 = vpop.permute.xlu0 %194  ;;  %815 = vmatpush3.bf16.msra.mxu0 %v377_v10 }
 0x31f   :  { %820 = vmatprep.subr.bf16.mxu0 %v1008_v0  ;;  %v218_v12 = vmul.f32 %v195_v35, %v1131_v22 }
 0x320   :  { %v197_v11 = vpop.permute.xlu1 %196 }
 0x321   :  { %v219_v13 = vmul.f32 %v197_v11, %v1131_v22 }
 0x322   :  { %v199_v36 = vpop.permute.xlu0 %198 }
 0x323   :  { %v226_v37 = vpack.c.bf16 %v219_v13, %v218_v12  ;;  %v220_v39 = vmul.f32 %v199_v36, %v1131_v22  ;;  %v80_v36 = vld [vmem:[#allocation7 + $0x8] ss:$0 sm:$0xff] }
 0x324   :  { %v201_v38 = vpop.permute.xlu1 %200 }
 0x325   :  { %v221_v40 = vmul.f32 %v201_v38, %v1131_v22  ;;  %439 = vrot.lane.b32.xlu0 %v226_v37, %s1010_s2  ;;  %v894_v41 = vpop.eup %893  ;;  %v890_v37 = vld [vmem:[#allocation5 + $0x1c] ss:$12 sps:$4 sm:$0xff]   ;;  %v891_v38 = vld [vmem:[#allocation5 + $0x34] ss:$12 sps:$4 sm:$0xff]  }
 0x326   :  { %v203_v42 = vpop.permute.xlu0 %202 }
 0x327   :  { %v896_v43 = vpop.eup %895  ;;  %v227_v44 = vpack.c.bf16 %v221_v40, %v220_v39  ;;  %v222_v47 = vmul.f32 %v203_v42, %v1134_v27  ;;  %v892_v39 = vld [vmem:[#allocation5 + $0x4c] ss:$12 sps:$4 sm:$0xff]  }
 0x328   :  { %v205_v45 = vpop.permute.xlu1 %204  ;;  %v324_v46 = vpack.c.bf16 %v896_v43, %v894_v41 }
 0x329   :  { %v223_v48 = vmul.f32 %v205_v45, %v1134_v27  ;;  %441 = vrot.lane.b32.xlu1 %v227_v44, %s1010_s2 }
 0x32a   :  { %817 = vmatmul.mubr.msk.bf16.vlgmr.msra.gmra.mrb[4].mxu0 %vm311_vm2, %v324_v46  ;;  %v207_v49 = vpop.permute.xlu0 %206 }
 0x32b   :  { %v228_v50 = vpack.c.bf16 %v223_v48, %v222_v47  ;;  %828 = vmatprep.mubr.msk.bf16.mxu0 %vm1009_vm0, %v1008_v0  ;;  %v224_v51 = vmul.f32 %v207_v49, %v1134_v27 }
 0x32c   :  { %v209_v22 = vpop.permute.xlu1 %208 }
 0x32d   :  { %v225_v52 = vmul.f32 %v209_v22, %v1134_v27  ;;  %443 = vrot.lane.b32.xlu0 %v228_v50, %s1010_s2 }
 0x32f   :  { %v229_v53 = vpack.c.bf16 %v225_v52, %v224_v51 }
 0x331   :  { %445 = vrot.lane.b32.xlu1 %v229_v53, %s1010_s2  ;;  %496 = vrot.lane.b32.xlu0 %v1079_v1, %s1012_s26 }
 0x335   :  { %498 = vrot.lane.b32.xlu1 %v1081_v2, %s1012_s26  ;;  %503 = vrot.lane.b32.xlu0 %v1128_v20, %s1012_s26 }
 0x397   :  { %v440_v54 = vpop.permute.xlu0 %439 }
 0x398   :  { %821 = vmatpush3.bf16.msra.mxu0 %v440_v54 }
 0x399   :  { %822 = vmatprep.subr.bf16.mxu0 %v1008_v0 }
 0x39b   :  { %v442_v55 = vpop.permute.xlu1 %441 }
 0x39c   :  { %823 = vmatpush3.bf16.msra.mxu0 %v442_v55 }
 0x39d   :  { %824 = vmatprep.subr.bf16.mxu0 %v1008_v0 }
 0x39f   :  { %v444_v27 = vpop.permute.xlu0 %443 }
 0x3a0   :  { %825 = vmatpush3.bf16.msra.mxu0 %v444_v27 }
 0x3a1   :  { %826 = vmatprep.subr.bf16.mxu0 %v1008_v0 }
 0x3a3   :  { %v446_v56 = vpop.permute.xlu1 %445  ;;  %v497_v1 = vpop.permute.xlu0 %496 }
 0x3a4   :  { %827 = vmatpush3.bf16.msra.mxu0 %v446_v56  ;;  %833 = vmatpush3.bf16.msra.mxu1 %v497_v1 }
 0x3a5   :  { %834 = vmatprep.subr.bf16.mxu1 %v1008_v0  ;;  %840 = vmatprep.subr.bf16.mxu0 %v1008_v0 }
 0x3a7   :  { %v499_v2 = vpop.permute.xlu1 %498  ;;  %v504_v23 = vpop.permute.xlu0 %503 }
 0x3a8   :  { %835 = vmatpush3.bf16.msra.mxu1 %v499_v2 }
 0x3a9   :  { %848 = vmatprep.subr.bf16.mxu1 %v1008_v0 }
 0x3fd   :  { %v419_v20 = vpop.f32.mrb[4].mxu0 }
 0x3fe   :  { %897 = vrcp.f32 %v419_v20  ;;  %v818_v57 = vpop.f32.mrb[5].mxu0  ;;  %vm426_vm3 = vcmp.gt.f32.partialorder %v419_v20, 0.0 }
 0x3ff   :  { %v422_v58 = vpop.f32.mrb[6].mxu0 }
 0x400   :  { %899 = vrcp.f32 %v422_v58  ;;  %v819_v59 = vpop.f32.mrb[7].mxu0  ;;  %vm427_vm4 = vcmp.gt.f32.partialorder %v422_v58, 0.0 }
 0x408   :  { %v898_v60 = vpop.eup %897 }
 0x409   :  { %v430_v61 = vsel %vm426_vm3, %v898_v60, 0.0 }
 0x40a   :  { %v900_v62 = vpop.eup %899  ;;  %v432_v8 = vmul.f32 %v894_v41, %v430_v61 }
 0x40b   :  { %v431_v63 = vsel %vm427_vm4, %v900_v62, 0.0 }
 0x40c   :  { %v433_v14 = vmul.f32 %v896_v43, %v431_v63 }
 0x40e   :  { %v434_v15 = vpack.c.bf16 %v433_v14, %v432_v8  ;;  %v81_v14 = vld [vmem:[#allocation7 + $0x10] ss:$0 sm:$0xff] }
 0x410   :  { %829 = vmatmul.mubr.msk.bf16.vlgmr.msra.gmra.mrb[8].mxu0 %vm311_vm2, %v434_v15 }
 0x411   :  { %844 = vmatprep.mubr.msk.bf16.mxu0 %vm1009_vm0, %v1008_v0 }
 0x4e3   :  { %v488_v16 = vpop.f32.mrb[8].mxu0 }
 0x4e4   :  { %v830_v17 = vpop.f32.mrb[9].mxu0 }
 0x4e5   :  { %v491_v18 = vpop.f32.mrb[10].mxu0 }
 0x4e6   :  { %v495_v19 = vpack.c.bf16 %v491_v18, %v488_v16  ;;  %v831_v21 = vpop.f32.mrb[11].mxu0 }
 0x4e8   :  { %837 = vmatmul.mubr.msk.bf16.vlgmr.msra.gmra.mrb[4].mxu1 %vm105_vm1, %v495_v19 }
 0x4e9   :  { %856 = vmatprep.mubr.msk.bf16.mxu1 %vm1009_vm0, %v1008_v0 }
 0x5bb   :  { %v543_v24 = vpop.f32.mrb[4].mxu1 }
 0x5bc   :  { %v544_v25 = vadd.f32 %v543_v24, %v504_v23  ;;  %v838_v26 = vpop.f32.mrb[5].mxu1 }
 0x5bd   :  { %v546_v28 = vpop.f32.mrb[6].mxu1 }
 0x5be   :  { %v547_v29 = vadd.f32 %v546_v28, %v504_v23  ;;  %v839_v30 = vpop.f32.mrb[7].mxu1  ;;  %v550_v9 = vadd.f32 %v544_v25, %v1084_v3 }
 0x5c0   :  { %v552_v6 = vsel %vm105_vm1, %v550_v9, 0.0  ;;  %v551_v31 = vadd.f32 %v547_v29, %v1086_v4  ;;  %v889_v4 = vld [vmem:[#allocation5 + $0x4] ss:$12 sps:$4 sm:$0xff]  }
 0x5c1   :  { %553 = vadd.xlane.f32.xlu1 %v552_v6  ;;  %841 = vmatpush3.bf16.msra.mxu0 %v889_v4 }
 0x5c2   :  { %v555_v32 = vsel %vm105_vm1, %v551_v31, 0.0  ;;  %842 = vmatprep.subr.bf16.mxu0 %v1008_v0 }
 0x5c3   :  { %556 = vadd.xlane.f32.xlu0 %v555_v32 }
 0x5c5   :  { %843 = vmatpush3.bf16.msra.mxu0 %v890_v37 }
 0x64e   :  { %v554_v7 = vpop.xlane.xlu1 %553 }
 0x64f   :  { %v559_v33 = vmul.f32 0.03125, %v554_v7 }
 0x650   :  { %v557_v34 = vpop.xlane.xlu0 %556 }
 0x651   :  { %v561_v5 = vsub.f32 %v550_v9, %v559_v33  ;;  %v560_v10 = vmul.f32 0.03125, %v557_v34 }
 0x653   :  { %v562_v35 = vsub.f32 %v551_v31, %v560_v10  ;;  %v563_v11 = vmul.f32 %v561_v5, %v561_v5 }
 0x655   :  { %v565_v12 = vsel %vm105_vm1, %v563_v11, 0.0  ;;  %v564_v13 = vmul.f32 %v562_v35, %v562_v35 }
 0x656   :  { %566 = vadd.xlane.f32.xlu0 %v565_v12 }
 0x657   :  { %v568_v3 = vsel %vm105_vm1, %v564_v13, 0.0 }
 0x658   :  { %569 = vadd.xlane.f32.xlu1 %v568_v3 }
 0x669   :  { %660 = vrot.lane.b32.xlu1 %v889_v4, %s1010_s2 }
 0x66c   :  { %582 = vrot.lane.b32.xlu0 %v80_v36, %s1011_s25 }
 0x66d   :  { %662 = vrot.lane.b32.xlu1 %v890_v37, %s1010_s2 }
 0x670   :  { %664 = vrot.lane.b32.xlu0 %v891_v38, %s1010_s2 }
 0x671   :  { %600 = vrot.lane.b32.xlu1 %v80_v36, %s1010_s2 }
 0x674   :  { %666 = vrot.lane.b32.xlu0 %v892_v39, %s1010_s2 }
 0x6e3   :  { %v567_v40 = vpop.xlane.xlu0 %566 }
 0x6e4   :  { %v571_v41 = vmul.f32 0.03125, %v567_v40 }
 0x6e5   :  { %v570_v42 = vpop.xlane.xlu1 %569 }
 0x6e6   :  { %v573_v43 = vadd.f32 1e-05, %v571_v41  ;;  %v572_v44 = vmul.f32 0.03125, %v570_v42 }
 0x6e7   :  { %v583_v52 = vpop.permute.xlu0 %582 }
 0x6e8   :  { %901 = vrsqrt.f32 %v573_v43  ;;  %v574_v45 = vadd.f32 1e-05, %v572_v44 }
 0x6e9   :  { %v661_v46 = vpop.permute.xlu1 %660 }
 0x6ea   :  { %903 = vrsqrt.f32 %v574_v45  ;;  %849 = vmatpush3.bf16.msra.mxu1 %v661_v46 }
 0x6eb   :  { %850 = vmatprep.subr.bf16.mxu1 %v1008_v0  ;;  %v665_v56 = vpop.permute.xlu0 %664 }
 0x6ed   :  { %v663_v47 = vpop.permute.xlu1 %662 }
 0x6ee   :  { %851 = vmatpush3.bf16.msra.mxu1 %v663_v47 }
 0x6ef   :  { %852 = vmatprep.subr.bf16.mxu1 %v1008_v0  ;;  %v667_v1 = vpop.permute.xlu0 %666 }
 0x6f1   :  { %v601_v2 = vpop.permute.xlu1 %600 }
 0x6f2   :  { %v902_v48 = vpop.eup %901  ;;  %853 = vmatpush3.bf16.msra.mxu1 %v665_v56 }
 0x6f3   :  { %v577_v49 = vmul.f32 %v902_v48, %v561_v5  ;;  %854 = vmatprep.subr.bf16.mxu1 %v1008_v0 }
 0x6f4   :  { %v904_v50 = vpop.eup %903 }
 0x6f5   :  { %v578_v22 = vmul.f32 %v904_v50, %v562_v35  ;;  %v579_v51 = vmul.f32 %v577_v49, %v80_v36 }
 0x6f6   :  { %855 = vmatpush3.bf16.msra.mxu1 %v667_v1 }
 0x6f7   :  { %v580_v53 = vmul.f32 %v578_v22, %v80_v36  ;;  %v585_v54 = vadd.f32 %v583_v52, %v579_v51 }
 0x6f9   :  { %v586_v55 = vadd.f32 %v583_v52, %v580_v53 }
 0x6fb   :  { %v587_v27 = vpack.c.bf16 %v586_v55, %v585_v54 }
 0x6fd   :  { %845 = vmatmul.mubr.msk.bf16.vlgmr.msra.gmra.mrb[12].mxu0 %vm105_vm1, %v587_v27 }
 0x7d0   :  { %v640_v20 = vpop.f32.mrb[12].mxu0 }
 0x7d1   :  { %v641_v57 = vadd.f32 %v640_v20, %v601_v2  ;;  %v846_v58 = vpop.f32.mrb[13].mxu0 }
 0x7d2   :  { %v643_v59 = vpop.f32.mrb[14].mxu0 }
 0x7d3   :  { %v644_v60 = vadd.f32 %v643_v59, %v601_v2  ;;  %v847_v61 = vpop.f32.mrb[15].mxu0  ;;  %v647_v62 = vmax.f32 %v641_v57, 0.0 }
 0x7d5   :  { %v648_v63 = vmax.f32 %v644_v60, 0.0 }
 0x7d7   :  { %v649_v8 = vpack.c.bf16 %v648_v63, %v647_v62 }
 0x7d9   :  { %857 = vmatmul.mubr.msk.bf16.vlgmr.msra.gmra.mrb[8].mxu1 %vm311_vm2, %v649_v8 }
 0x8ac   :  { %v709_v15 = vpop.f32.mrb[8].mxu1 }
 0x8ad   :  { %v710_v16 = vadd.f32 %v709_v15, %v81_v14  ;;  %v858_v17 = vpop.f32.mrb[9].mxu1 }
 0x8ae   :  { %v712_v18 = vpop.f32.mrb[10].mxu1 }
 0x8af   :  { %v716_v0 = vadd.f32 %v710_v16, %v585_v54  ;;  %v713_v19 = vadd.f32 %v712_v18, %v81_v14  ;;  %v859_v21 = vpop.f32.mrb[11].mxu1 }
 0x8b1   :  { %718 = vst.msk [vmem:[#allocation8] sm:$0xff] %vm105_vm1, %v716_v0  ;;  %v717_v23 = vadd.f32 %v713_v19, %v586_v55 }
 0x8b3   :  { %719 = vst.msk [vmem:[#allocation8 + $0x8] sm:$0xff] %vm105_vm1, %v717_v23 }
 0x8b4   :  { %982 = shalt.err (!%p979_p0)
}
 0x8b5   :  { %s983_s5 = scalar_lea.hbm %s1270_s3, 256 }
 0x8b6   :  { %p984_p1 = scmp.ne.s32.totalorder %s1270_s3, %s983_s5  ;;  %p987_p2 = scmp.lt.u32.totalorder %s983_s5, %s1270_s3 }
 0x8b8   :  { %p989_p3 = pnand %p987_p2, %p984_p1 }
 0x8ba   :  { %992 = shalt.err (!%p989_p3)
}
 0x8bb   :  { %731 = dma.vmem_to_hbm [thread:$0]  %s726_s28, 256, %s1270_s3, [#allocation4], %s1003_s1, %s1003_s1, %s1004_s9  }
 0x8bc   :  { %997 = dma.done.wait [#allocation4], 256  }
 0x8bd   :  { %998 = vsyncadd [#allocation4], 4294967040 }
 0x8be   :  { %735 = vsyncpa [#allocation3], 1 }
 0x8bf   :  { %736 = vsyncpa [#allocation6], 1 }
 0x8c0   :  { %737 = vsyncpa [#allocation4], 1 }

</bundles_post_ra>
